<compile_context>
chip_gen: v5e
topology: v5e:2x2
jax: 0.10.0
libtpu: 0.0.40
codegen_flags: <defaults>
</compile_context>

<pallas_src>
import jax
import jax.numpy as jnp
from jax.experimental import pallas as pl
from jax.experimental.pallas import tpu as pltpu


def _round_up(x, m):
    return (x + m - 1) // m * m


# ----------------------------------------------------------------------------
# VMEM budget / lane tiling
# ----------------------------------------------------------------------------
def _vmem_limits():
    try:
        cap = int(pltpu.get_tpu_info().vmem_capacity_bytes)
    except Exception:
        cap = 64 * 1024 * 1024          # conservative: v7x has 64 MiB per TensorCore
    limit = min(int(cap * 0.75), 100 * 1024 * 1024)   # ~48 MiB v7x, ~96 MiB v5e/v6e
    budget = max(limit - 4 * 1024 * 1024, 8 * 1024 * 1024)  # headroom: weights, scratch
    return limit, budget


def _choose_lane_tiling(B, L, c_in_p, c_out_p, c_max_p, vmem_budget_bytes):
    """Pick (lane tile, grid size): each tile is a multiple of 128 lanes, contains only
    whole sequences (so in-register shifts never need a halo), is as large as the VMEM
    budget allows (per-grid-step overhead amortization), and keeps grid_n >= 2 when
    possible so the 'parallel' grid axis can shard across v7x's two TensorCores."""
    NL = B * L
    cands = [bt for bt in range(1, B + 1) if B % bt == 0 and (bt * L) % 128 == 0]
    if not cands:
        # Tiny problems (e.g. B*L < 128): one lane-dense tile, zero-padded to 128 lanes.
        return _round_up(NL, 128), 1

    def live_bytes(n):
        # double-buffered input+output tiles + ~6 activation-sized f32 temporaries
        return 4 * n * (2 * c_in_p + 2 * c_out_p + 6 * c_max_p)

    fitting = [bt for bt in cands if live_bytes(bt * L) <= vmem_budget_bytes]
    if not fitting:
        fitting = [min(cands)]

    TARGET = 8192                       # lanes; sweet spot per measured roofline data
    multi = [bt for bt in fitting if B // bt >= 2]
    pool = multi if multi else fitting
    good = [bt for bt in pool if bt * L <= TARGET]
    bt = max(good) if good else min(pool)
    return bt * L, B // bt


# ----------------------------------------------------------------------------
# Fused kernel: all residual blocks (conv1 -> chomp -> relu -> conv2 -> chomp ->
# relu -> (+ residual / 1x1 downsample) -> relu) in one pass over a lane tile.
# ----------------------------------------------------------------------------
def _make_tcn_kernel(cfgs, L, tile_n):
    def kernel(x_ref, w_ref, b_ref, o_ref):
        # Position of each lane within its sequence. Identical for every grid step
        # because every lane tile contains only whole sequences.
        pos = jax.lax.broadcasted_iota(jnp.int32, (1, tile_n), 1) % L

        masks = {}

        def causal_mask(s):
            if s not in masks:
                masks[s] = pos >= s      # (1, TILE_N); computed once per distinct shift
            return masks[s]

        def shift_right(v, s):
            # out[:, t] = v[:, t - s] within each sequence; 0 for t < s (causal pad).
            if s == 0:
                return v
            rolled = pltpu.roll(v, shift=s, axis=1)
            return jnp.where(causal_mask(s), rolled, 0.0)

        def load_bias(bias):
            col, rows = bias
            return b_ref[0:rows, col:col + 1]

        def causal_conv(v, taps, bias):
            # K taps as K small bf16 MXU matmuls accumulated in f32 (no concatenated
            # (K*C, N) RHS buffer).
            acc = None
            for (off, rows, cols, shift) in taps:
                wk = w_ref[0:rows, off:off + cols]                  # bf16, static slice
                tap = shift_right(v, shift).astype(wk.dtype)        # bf16 RHS operand
                y = jnp.dot(wk, tap, preferred_element_type=jnp.float32)
                acc = y if acc is None else acc + y
            return acc + load_bias(bias)

        act = x_ref[...].astype(jnp.float32)

        for cfg in cfgs:
            h = jnp.maximum(causal_conv(act, cfg["conv1"], cfg["b1"]), 0.0)
            # TODO(synk): dropout layers are identity at inference; intentionally omitted.
            h = jnp.maximum(causal_conv(h, cfg["conv2"], cfg["b2"]), 0.0)

            if cfg["ds"] is not None:
                off, rows, cols = cfg["ds"]
                wd = w_ref[0:rows, off:off + cols]
                res = jnp.dot(wd, act.astype(wd.dtype),
                              preferred_element_type=jnp.float32) + load_bias(cfg["bd"])
            else:
                res = act
            act = jnp.maximum(h + res, 0.0)

        o_ref[...] = act.astype(o_ref.dtype)

    return kernel


# ----------------------------------------------------------------------------
# Glue: weight packing (one bf16 weight slab + one f32 bias slab), layout,
# and the single pallas_call for the whole network.
# ----------------------------------------------------------------------------
def _pack_params(params, C0):
    C0p = _round_up(C0, 8)
    w_pieces, b_pieces, cfgs = [], [], []
    wcol, bcol = 0, 0
    c_in, c_in_p, c_max_p = C0, C0p, C0p

    def add_w(arr2d):
        nonlocal wcol
        off = wcol
        w_pieces.append((arr2d, off))
        wcol += _round_up(arr2d.shape[1], 128)     # 128-aligned column offsets
        return off

    def add_b(arr_col):
        nonlocal bcol
        j = bcol
        b_pieces.append((arr_col, j))
        bcol += 1
        return j

    for p in params:
        K, d = p["kernel_size"], p["dilation"]
        C_out = p["w1"].shape[0]
        C_out_p = _round_up(C_out, 8)
        c_max_p = max(c_max_p, C_out_p)

        conv1 = []
        for k in range(K):
            wk = jnp.pad(p["w1"][:, :, k], ((0, C_out_p - C_out), (0, c_in_p - c_in)))
            conv1.append((add_w(wk), C_out_p, c_in_p, (K - 1 - k) * d))
        b1 = (add_b(jnp.pad(p["b1"], ((0, C_out_p - C_out), (0, 0)))), C_out_p)

        conv2 = []
        for k in range(K):
            wk = jnp.pad(p["w2"][:, :, k], ((0, C_out_p - C_out), (0, C_out_p - C_out)))
            conv2.append((add_w(wk), C_out_p, C_out_p, (K - 1 - k) * d))
        b2 = (add_b(jnp.pad(p["b2"], ((0, C_out_p - C_out), (0, 0)))), C_out_p)

        if p["wd"] is not None:
            wd = jnp.pad(p["wd"], ((0, C_out_p - C_out), (0, c_in_p - c_in)))
            ds = (add_w(wd), C_out_p, c_in_p)
            bd = (add_b(jnp.pad(p["bd"], ((0, C_out_p - C_out), (0, 0)))), C_out_p)
        else:
            ds, bd = None, None

        cfgs.append(dict(conv1=conv1, b1=b1, conv2=conv2, b2=b2, ds=ds, bd=bd))
        c_in, c_in_p = C_out, C_out_p

    w_packed = jnp.zeros((c_max_p, max(wcol, 128)), jnp.float32)
    for a, off in w_pieces:
        w_packed = w_packed.at[:a.shape[0], off:off + a.shape[1]].set(a)
    w_packed = w_packed.astype(jnp.bfloat16)   # bf16 MXU operands, f32 accumulation

    b_packed = jnp.zeros((c_max_p, max(bcol, 1)), jnp.float32)
    for a, j in b_pieces:
        b_packed = b_packed.at[:a.shape[0], j:j + 1].set(a)

    return cfgs, w_packed, b_packed, C0p, c_in, c_in_p, c_max_p


def dilated_tcn_forward(x, params):
    """x: (B, C_in, L) float32 -> (B, C_last, L) float32 (causal TCN forward)."""
    B, C0, L = x.shape
    cfgs, w_packed, b_packed, C0p, c_last, c_last_p, c_max_p = _pack_params(params, C0)

    vmem_limit, vmem_budget = _vmem_limits()
    TILE_N, grid_n = _choose_lane_tiling(B, L, C0p, c_last_p, c_max_p, vmem_budget)
    TN = TILE_N * grid_n
    NL = B * L

    # Activations as (C, B*L): channels on sublanes, batch folded into lanes.
    xc = jnp.transpose(x, (1, 0, 2)).reshape(C0, NL)
    xc = jnp.pad(xc, ((0, C0p - C0), (0, TN - NL)))

    kernel = _make_tcn_kernel(cfgs, L, TILE_N)
    out = pl.pallas_call(
        kernel,
        out_shape=jax.ShapeDtypeStruct((c_last_p, TN), x.dtype),
        grid=(grid_n,),
        in_specs=[
            # NOTE: if xprof shows exposed input-tile DMA at very large TILE_N, add
            # pipeline_mode=pl.Buffered(3) to the x / output specs.
            pl.BlockSpec((C0p, TILE_N), lambda g: (0, g)),
            pl.BlockSpec(w_packed.shape, lambda g: (0, 0)),   # resident constants
            pl.BlockSpec(b_packed.shape, lambda g: (0, 0)),
        ],
        out_specs=pl.BlockSpec((c_last_p, TILE_N), lambda g: (0, g)),
        compiler_params=pltpu.CompilerParams(
            dimension_semantics=("parallel",),
            vmem_limit_bytes=vmem_limit),
    )(xc, w_packed, b_packed)

    # Drop channel / lane padding and restore (B, C, L).
    out = out[:c_last, :NL].reshape(c_last, B, L)
    return jnp.transpose(out, (1, 0, 2))


# ----------------------------------------------------------------------------
# Deterministic synthetic parameters.  weight_norm reparam (w = g * v/||v||,
# per-output-channel norm) is applied in glue so the kernel sees plain weights.
# Weight layout matches nn.Conv1d: (C_out, C_in, K).
# ----------------------------------------------------------------------------
def init_params(key, num_inputs, num_channels, kernel_size=2):
    params = []
    for i, c_out in enumerate(num_channels):
        c_in = num_inputs if i == 0 else num_channels[i - 1]
        d = 2 ** i
        key, *ks = jax.random.split(key, 9)

        def weight_norm_w(kv, kg, shape):
            v = 0.01 * jax.random.normal(kv, shape, jnp.float32)
            g = 0.01 * (jnp.abs(jax.random.normal(kg, (shape[0], 1, 1),
                                                  jnp.float32)) + 0.5)
            nrm = jnp.sqrt(jnp.sum(v * v, axis=(1, 2), keepdims=True)) + 1e-12
            return g * v / nrm                       # (C_out, C_in, K)

        w1 = weight_norm_w(ks[0], ks[1], (c_out, c_in, kernel_size))
        w2 = weight_norm_w(ks[2], ks[3], (c_out, c_out, kernel_size))
        b1 = 0.01 * jax.random.normal(ks[4], (c_out, 1), jnp.float32)
        b2 = 0.01 * jax.random.normal(ks[5], (c_out, 1), jnp.float32)
        if c_in != c_out:
            wd = 0.01 * jax.random.normal(ks[6], (c_out, c_in), jnp.float32)
            bd = 0.01 * jax.random.normal(ks[7], (c_out, 1), jnp.float32)
        else:
            wd, bd = None, None
        params.append(dict(w1=w1, w2=w2, b1=b1, b2=b2, wd=wd, bd=bd,
                           dilation=d, kernel_size=kernel_size))
    return params


# ----------------------------------------------------------------------------
# Pure-JAX reference (correctness check only).
# ----------------------------------------------------------------------------
def _causal_conv_ref(x, w, b, d):
    C_out, C_in, K = w.shape
    P = (K - 1) * d
    L = x.shape[2]
    xpad = jnp.pad(x, ((0, 0), (0, 0), (P, 0)))
    y = jnp.zeros((x.shape[0], C_out, L), jnp.float32)
    for k in range(K):
        y = y + jnp.einsum("oi,bil->bol", w[:, :, k],
                           xpad[:, :, k * d: k * d + L],
                           precision=jax.lax.Precision.HIGHEST)
    return y + b[None]


def dilated_tcn_ref(x, params):
    out = x
    for p in params:
        d = p["dilation"]
        h1 = jax.nn.relu(_causal_conv_ref(out, p["w1"], p["b1"], d))
        h2 = jax.nn.relu(_causal_conv_ref(h1, p["w2"], p["b2"], d))
        if p["wd"] is None:
            res = out
        else:
            res = jnp.einsum("oi,bil->bol", p["wd"], out,
                             precision=jax.lax.Precision.HIGHEST) + p["bd"][None]
        out = jax.nn.relu(h2 + res)
    return out


if __name__ == "__main__":
    key = jax.random.PRNGKey(0)
    kx, kp = jax.random.split(key)

    # Small shapes consistent with nn.Conv1d input (N, C, L).
    B, C0, L = 2, 4, 32
    num_channels = (8, 8, 16)        # dilations 1, 2, 4 ; paddings 1, 2, 4

    x = jax.random.normal(kx, (B, C0, L), jnp.float32)
    params = init_params(kp, C0, num_channels, kernel_size=2)

    y = jax.block_until_ready(dilated_tcn_forward(x, params))
    y_ref = dilated_tcn_ref(x, params)

    assert y.shape == (B, num_channels[-1], L), y.shape
    max_err = float(jnp.max(jnp.abs(y - y_ref)))
    # bf16 MXU operands (f32 accumulation) vs. a Precision.HIGHEST f32 reference.
    assert jnp.allclose(y, y_ref, atol=2e-2, rtol=2e-2), max_err

    print("KERNEL_OK")
</pallas_src>

<mosaic_0001>
module attributes {stable_mosaic.version = 11 : i64} {
  func.func @kernel(%arg0: i32, %arg1: memref<8x128xf32, #tpu.memory_space<vmem>>, %arg2: memref<16x1792xbf16, #tpu.memory_space<vmem>>, %arg3: memref<16x8xf32, #tpu.memory_space<vmem>>, %arg4: memref<16x128xf32, #tpu.memory_space<vmem>>) attributes {dimension_semantics = [#tpu.dimension_semantics<parallel>], iteration_bounds = array<i64: 1>, scalar_prefetch = 0 : i64, scratch_operands = 0 : i64, tpu.core_type = #tpu.core_type<tc>, window_params = [{transform_indices = @transform_0, window_bounds = array<i64: 8, 128>}, {pipeline_mode = #tpu.pipeline_mode<synchronous>, transform_indices = @transform_1, window_bounds = array<i64: 16, 1792>}, {pipeline_mode = #tpu.pipeline_mode<synchronous>, transform_indices = @transform_2, window_bounds = array<i64: 16, 8>}, {transform_indices = @transform_3, window_bounds = array<i64: 16, 128>}]} {
    %0 = tpu.iota {dimensions = array<i32: 1>} : vector<1x128xi32>
    %c32_i32 = arith.constant 32 : i32
    %c0_i32 = arith.constant 0 : i32
    %1 = arith.cmpi eq, %c32_i32, %c0_i32 : i32
    %c1_i32 = arith.constant 1 : i32
    %2 = arith.select %1, %c1_i32, %c32_i32 : i32
    %3 = vector.broadcast %2 : i32 to vector<1x128xi32>
    %4 = arith.remsi %0, %3 : vector<1x128xi32>
    %c0_i32_0 = arith.constant 0 : i32
    %5 = vector.broadcast %c0_i32_0 : i32 to vector<1x128xi32>
    %6 = arith.cmpi ne, %4, %5 : vector<1x128xi32>
    %c0_i32_1 = arith.constant 0 : i32
    %7 = vector.broadcast %c0_i32_1 : i32 to vector<1x128xi32>
    %8 = arith.cmpi slt, %4, %7 : vector<1x128xi32>
    %c0_i32_2 = arith.constant 0 : i32
    %9 = arith.cmpi slt, %2, %c0_i32_2 : i32
    %10 = vector.broadcast %9 : i1 to vector<1x128xi1>
    %11 = vector.broadcast %10 : vector<1x128xi1> to vector<1x128xi1>
    %12 = arith.xori %8, %11 : vector<1x128xi1>
    %13 = arith.andi %12, %6 : vector<1x128xi1>
    %14 = vector.broadcast %2 : i32 to vector<1x128xi32>
    %15 = arith.addi %4, %14 : vector<1x128xi32>
    %16 = arith.select %13, %15, %4 : vector<1x128xi1>, vector<1x128xi32>
    %c0 = arith.constant 0 : index
    %c0_3 = arith.constant 0 : index
    %17 = vector.load %arg1[%c0, %c0_3] : memref<8x128xf32, #tpu.memory_space<vmem>>, vector<8x128xf32>
    %c0_4 = arith.constant 0 : index
    %c0_5 = arith.constant 0 : index
    %18 = vector.load %arg2[%c0_4, %c0_5] : memref<16x1792xbf16, #tpu.memory_space<vmem>>, vector<8x8xbf16>
    %c1_i32_6 = arith.constant 1 : i32
    %19 = tpu.dynamic_rotate %17 by %c1_i32_6 dim 1 : vector<8x128xf32>, i32 -> vector<8x128xf32>
    %c1_i32_7 = arith.constant 1 : i32
    %20 = vector.broadcast %c1_i32_7 : i32 to vector<1x128xi32>
    %21 = arith.cmpi sge, %16, %20 : vector<1x128xi32>
    %cst = arith.constant 0.000000e+00 : f32
    %22 = vector.shape_cast %21 : vector<1x128xi1> to vector<1x128xi1>
    %23 = vector.broadcast %22 : vector<1x128xi1> to vector<8x128xi1>
    %24 = vector.broadcast %cst : f32 to vector<8x128xf32>
    %25 = arith.select %23, %19, %24 : vector<8x128xi1>, vector<8x128xf32>
    %26 = arith.truncf %25 : vector<8x128xf32> to vector<8x128xbf16>
    %cst_8 = arith.constant dense<0.000000e+00> : vector<8x128xf32>
    %27 = tpu.matmul %18, %26, %cst_8 {dimension_numbers = #tpu.dot_dimension_numbers<[1], [0], [0], [1], [0, 0, 1, 1], [], []>} : vector<8x8xbf16>, vector<8x128xbf16>, vector<8x128xf32> -> vector<8x128xf32>
    %c0_9 = arith.constant 0 : index
    %c128 = arith.constant 128 : index
    %28 = vector.load %arg2[%c0_9, %c128] : memref<16x1792xbf16, #tpu.memory_space<vmem>>, vector<8x8xbf16>
    %29 = arith.truncf %17 : vector<8x128xf32> to vector<8x128xbf16>
    %cst_10 = arith.constant dense<0.000000e+00> : vector<8x128xf32>
    %30 = tpu.matmul %28, %29, %cst_10 {dimension_numbers = #tpu.dot_dimension_numbers<[1], [0], [0], [1], [0, 0, 1, 1], [], []>} : vector<8x8xbf16>, vector<8x128xbf16>, vector<8x128xf32> -> vector<8x128xf32>
    %31 = arith.addf %27, %30 : vector<8x128xf32>
    %c0_11 = arith.constant 0 : index
    %c0_12 = arith.constant 0 : index
    %32 = vector.load %arg3[%c0_11, %c0_12] : memref<16x8xf32, #tpu.memory_space<vmem>>, vector<8x1xf32>
    %33 = vector.broadcast %32 : vector<8x1xf32> to vector<8x128xf32>
    %34 = arith.addf %31, %33 : vector<8x128xf32>
    %cst_13 = arith.constant 0.000000e+00 : f32
    %35 = vector.broadcast %cst_13 : f32 to vector<8x128xf32>
    %36 = arith.maximumf %34, %35 : vector<8x128xf32>
    %c0_14 = arith.constant 0 : index
    %c256 = arith.constant 256 : index
    %37 = vector.load %arg2[%c0_14, %c256] : memref<16x1792xbf16, #tpu.memory_space<vmem>>, vector<8x8xbf16>
    %c1_i32_15 = arith.constant 1 : i32
    %38 = tpu.dynamic_rotate %36 by %c1_i32_15 dim 1 : vector<8x128xf32>, i32 -> vector<8x128xf32>
    %cst_16 = arith.constant 0.000000e+00 : f32
    %39 = vector.shape_cast %21 : vector<1x128xi1> to vector<1x128xi1>
    %40 = vector.broadcast %39 : vector<1x128xi1> to vector<8x128xi1>
    %41 = vector.broadcast %cst_16 : f32 to vector<8x128xf32>
    %42 = arith.select %40, %38, %41 : vector<8x128xi1>, vector<8x128xf32>
    %43 = arith.truncf %42 : vector<8x128xf32> to vector<8x128xbf16>
    %cst_17 = arith.constant dense<0.000000e+00> : vector<8x128xf32>
    %44 = tpu.matmul %37, %43, %cst_17 {dimension_numbers = #tpu.dot_dimension_numbers<[1], [0], [0], [1], [0, 0, 1, 1], [], []>} : vector<8x8xbf16>, vector<8x128xbf16>, vector<8x128xf32> -> vector<8x128xf32>
    %c0_18 = arith.constant 0 : index
    %c384 = arith.constant 384 : index
    %45 = vector.load %arg2[%c0_18, %c384] : memref<16x1792xbf16, #tpu.memory_space<vmem>>, vector<8x8xbf16>
    %46 = arith.truncf %36 : vector<8x128xf32> to vector<8x128xbf16>
    %cst_19 = arith.constant dense<0.000000e+00> : vector<8x128xf32>
    %47 = tpu.matmul %45, %46, %cst_19 {dimension_numbers = #tpu.dot_dimension_numbers<[1], [0], [0], [1], [0, 0, 1, 1], [], []>} : vector<8x8xbf16>, vector<8x128xbf16>, vector<8x128xf32> -> vector<8x128xf32>
    %48 = arith.addf %44, %47 : vector<8x128xf32>
    %c0_20 = arith.constant 0 : index
    %c1 = arith.constant 1 : index
    %49 = vector.load %arg3[%c0_20, %c1] : memref<16x8xf32, #tpu.memory_space<vmem>>, vector<8x1xf32>
    %50 = vector.broadcast %49 : vector<8x1xf32> to vector<8x128xf32>
    %51 = arith.addf %48, %50 : vector<8x128xf32>
    %cst_21 = arith.constant 0.000000e+00 : f32
    %52 = vector.broadcast %cst_21 : f32 to vector<8x128xf32>
    %53 = arith.maximumf %51, %52 : vector<8x128xf32>
    %c0_22 = arith.constant 0 : index
    %c512 = arith.constant 512 : index
    %54 = vector.load %arg2[%c0_22, %c512] : memref<16x1792xbf16, #tpu.memory_space<vmem>>, vector<8x8xbf16>
    %55 = arith.truncf %17 : vector<8x128xf32> to vector<8x128xbf16>
    %cst_23 = arith.constant dense<0.000000e+00> : vector<8x128xf32>
    %56 = tpu.matmul %54, %55, %cst_23 {dimension_numbers = #tpu.dot_dimension_numbers<[1], [0], [0], [1], [0, 0, 1, 1], [], []>} : vector<8x8xbf16>, vector<8x128xbf16>, vector<8x128xf32> -> vector<8x128xf32>
    %c0_24 = arith.constant 0 : index
    %c2 = arith.constant 2 : index
    %57 = vector.load %arg3[%c0_24, %c2] : memref<16x8xf32, #tpu.memory_space<vmem>>, vector<8x1xf32>
    %58 = vector.broadcast %57 : vector<8x1xf32> to vector<8x128xf32>
    %59 = arith.addf %56, %58 : vector<8x128xf32>
    %60 = arith.addf %53, %59 : vector<8x128xf32>
    %cst_25 = arith.constant 0.000000e+00 : f32
    %61 = vector.broadcast %cst_25 : f32 to vector<8x128xf32>
    %62 = arith.maximumf %60, %61 : vector<8x128xf32>
    %c0_26 = arith.constant 0 : index
    %c640 = arith.constant 640 : index
    %63 = vector.load %arg2[%c0_26, %c640] : memref<16x1792xbf16, #tpu.memory_space<vmem>>, vector<8x8xbf16>
    %c2_i32 = arith.constant 2 : i32
    %64 = tpu.dynamic_rotate %62 by %c2_i32 dim 1 : vector<8x128xf32>, i32 -> vector<8x128xf32>
    %c2_i32_27 = arith.constant 2 : i32
    %65 = vector.broadcast %c2_i32_27 : i32 to vector<1x128xi32>
    %66 = arith.cmpi sge, %16, %65 : vector<1x128xi32>
    %cst_28 = arith.constant 0.000000e+00 : f32
    %67 = vector.shape_cast %66 : vector<1x128xi1> to vector<1x128xi1>
    %68 = vector.broadcast %67 : vector<1x128xi1> to vector<8x128xi1>
    %69 = vector.broadcast %cst_28 : f32 to vector<8x128xf32>
    %70 = arith.select %68, %64, %69 : vector<8x128xi1>, vector<8x128xf32>
    %71 = arith.truncf %70 : vector<8x128xf32> to vector<8x128xbf16>
    %cst_29 = arith.constant dense<0.000000e+00> : vector<8x128xf32>
    %72 = tpu.matmul %63, %71, %cst_29 {dimension_numbers = #tpu.dot_dimension_numbers<[1], [0], [0], [1], [0, 0, 1, 1], [], []>} : vector<8x8xbf16>, vector<8x128xbf16>, vector<8x128xf32> -> vector<8x128xf32>
    %c0_30 = arith.constant 0 : index
    %c768 = arith.constant 768 : index
    %73 = vector.load %arg2[%c0_30, %c768] : memref<16x1792xbf16, #tpu.memory_space<vmem>>, vector<8x8xbf16>
    %74 = arith.truncf %62 : vector<8x128xf32> to vector<8x128xbf16>
    %cst_31 = arith.constant dense<0.000000e+00> : vector<8x128xf32>
    %75 = tpu.matmul %73, %74, %cst_31 {dimension_numbers = #tpu.dot_dimension_numbers<[1], [0], [0], [1], [0, 0, 1, 1], [], []>} : vector<8x8xbf16>, vector<8x128xbf16>, vector<8x128xf32> -> vector<8x128xf32>
    %76 = arith.addf %72, %75 : vector<8x128xf32>
    %c0_32 = arith.constant 0 : index
    %c3 = arith.constant 3 : index
    %77 = vector.load %arg3[%c0_32, %c3] : memref<16x8xf32, #tpu.memory_space<vmem>>, vector<8x1xf32>
    %78 = vector.broadcast %77 : vector<8x1xf32> to vector<8x128xf32>
    %79 = arith.addf %76, %78 : vector<8x128xf32>
    %cst_33 = arith.constant 0.000000e+00 : f32
    %80 = vector.broadcast %cst_33 : f32 to vector<8x128xf32>
    %81 = arith.maximumf %79, %80 : vector<8x128xf32>
    %c0_34 = arith.constant 0 : index
    %c896 = arith.constant 896 : index
    %82 = vector.load %arg2[%c0_34, %c896] : memref<16x1792xbf16, #tpu.memory_space<vmem>>, vector<8x8xbf16>
    %c2_i32_35 = arith.constant 2 : i32
    %83 = tpu.dynamic_rotate %81 by %c2_i32_35 dim 1 : vector<8x128xf32>, i32 -> vector<8x128xf32>
    %cst_36 = arith.constant 0.000000e+00 : f32
    %84 = vector.shape_cast %66 : vector<1x128xi1> to vector<1x128xi1>
    %85 = vector.broadcast %84 : vector<1x128xi1> to vector<8x128xi1>
    %86 = vector.broadcast %cst_36 : f32 to vector<8x128xf32>
    %87 = arith.select %85, %83, %86 : vector<8x128xi1>, vector<8x128xf32>
    %88 = arith.truncf %87 : vector<8x128xf32> to vector<8x128xbf16>
    %cst_37 = arith.constant dense<0.000000e+00> : vector<8x128xf32>
    %89 = tpu.matmul %82, %88, %cst_37 {dimension_numbers = #tpu.dot_dimension_numbers<[1], [0], [0], [1], [0, 0, 1, 1], [], []>} : vector<8x8xbf16>, vector<8x128xbf16>, vector<8x128xf32> -> vector<8x128xf32>
    %c0_38 = arith.constant 0 : index
    %c1024 = arith.constant 1024 : index
    %90 = vector.load %arg2[%c0_38, %c1024] : memref<16x1792xbf16, #tpu.memory_space<vmem>>, vector<8x8xbf16>
    %91 = arith.truncf %81 : vector<8x128xf32> to vector<8x128xbf16>
    %cst_39 = arith.constant dense<0.000000e+00> : vector<8x128xf32>
    %92 = tpu.matmul %90, %91, %cst_39 {dimension_numbers = #tpu.dot_dimension_numbers<[1], [0], [0], [1], [0, 0, 1, 1], [], []>} : vector<8x8xbf16>, vector<8x128xbf16>, vector<8x128xf32> -> vector<8x128xf32>
    %93 = arith.addf %89, %92 : vector<8x128xf32>
    %c0_40 = arith.constant 0 : index
    %c4 = arith.constant 4 : index
    %94 = vector.load %arg3[%c0_40, %c4] : memref<16x8xf32, #tpu.memory_space<vmem>>, vector<8x1xf32>
    %95 = vector.broadcast %94 : vector<8x1xf32> to vector<8x128xf32>
    %96 = arith.addf %93, %95 : vector<8x128xf32>
    %cst_41 = arith.constant 0.000000e+00 : f32
    %97 = vector.broadcast %cst_41 : f32 to vector<8x128xf32>
    %98 = arith.maximumf %96, %97 : vector<8x128xf32>
    %99 = arith.addf %98, %62 : vector<8x128xf32>
    %cst_42 = arith.constant 0.000000e+00 : f32
    %100 = vector.broadcast %cst_42 : f32 to vector<8x128xf32>
    %101 = arith.maximumf %99, %100 : vector<8x128xf32>
    %c0_43 = arith.constant 0 : index
    %c1152 = arith.constant 1152 : index
    %102 = vector.load %arg2[%c0_43, %c1152] : memref<16x1792xbf16, #tpu.memory_space<vmem>>, vector<16x8xbf16>
    %c4_i32 = arith.constant 4 : i32
    %103 = tpu.dynamic_rotate %101 by %c4_i32 dim 1 : vector<8x128xf32>, i32 -> vector<8x128xf32>
    %c4_i32_44 = arith.constant 4 : i32
    %104 = vector.broadcast %c4_i32_44 : i32 to vector<1x128xi32>
    %105 = arith.cmpi sge, %16, %104 : vector<1x128xi32>
    %cst_45 = arith.constant 0.000000e+00 : f32
    %106 = vector.shape_cast %105 : vector<1x128xi1> to vector<1x128xi1>
    %107 = vector.broadcast %106 : vector<1x128xi1> to vector<8x128xi1>
    %108 = vector.broadcast %cst_45 : f32 to vector<8x128xf32>
    %109 = arith.select %107, %103, %108 : vector<8x128xi1>, vector<8x128xf32>
    %110 = arith.truncf %109 : vector<8x128xf32> to vector<8x128xbf16>
    %cst_46 = arith.constant dense<0.000000e+00> : vector<16x128xf32>
    %111 = tpu.matmul %102, %110, %cst_46 {dimension_numbers = #tpu.dot_dimension_numbers<[1], [0], [0], [1], [0, 0, 1, 1], [], []>} : vector<16x8xbf16>, vector<8x128xbf16>, vector<16x128xf32> -> vector<16x128xf32>
    %c0_47 = arith.constant 0 : index
    %c1280 = arith.constant 1280 : index
    %112 = vector.load %arg2[%c0_47, %c1280] : memref<16x1792xbf16, #tpu.memory_space<vmem>>, vector<16x8xbf16>
    %113 = arith.truncf %101 : vector<8x128xf32> to vector<8x128xbf16>
    %cst_48 = arith.constant dense<0.000000e+00> : vector<16x128xf32>
    %114 = tpu.matmul %112, %113, %cst_48 {dimension_numbers = #tpu.dot_dimension_numbers<[1], [0], [0], [1], [0, 0, 1, 1], [], []>} : vector<16x8xbf16>, vector<8x128xbf16>, vector<16x128xf32> -> vector<16x128xf32>
    %115 = arith.addf %111, %114 : vector<16x128xf32>
    %c0_49 = arith.constant 0 : index
    %c5 = arith.constant 5 : index
    %116 = vector.load %arg3[%c0_49, %c5] : memref<16x8xf32, #tpu.memory_space<vmem>>, vector<16x1xf32>
    %117 = vector.broadcast %116 : vector<16x1xf32> to vector<16x128xf32>
    %118 = arith.addf %115, %117 : vector<16x128xf32>
    %cst_50 = arith.constant 0.000000e+00 : f32
    %119 = vector.broadcast %cst_50 : f32 to vector<16x128xf32>
    %120 = arith.maximumf %118, %119 : vector<16x128xf32>
    %c0_51 = arith.constant 0 : index
    %c1408 = arith.constant 1408 : index
    %121 = vector.load %arg2[%c0_51, %c1408] : memref<16x1792xbf16, #tpu.memory_space<vmem>>, vector<16x16xbf16>
    %c4_i32_52 = arith.constant 4 : i32
    %122 = tpu.dynamic_rotate %120 by %c4_i32_52 dim 1 : vector<16x128xf32>, i32 -> vector<16x128xf32>
    %cst_53 = arith.constant 0.000000e+00 : f32
    %123 = vector.shape_cast %105 : vector<1x128xi1> to vector<1x128xi1>
    %124 = vector.broadcast %123 : vector<1x128xi1> to vector<16x128xi1>
    %125 = vector.broadcast %cst_53 : f32 to vector<16x128xf32>
    %126 = arith.select %124, %122, %125 : vector<16x128xi1>, vector<16x128xf32>
    %127 = arith.truncf %126 : vector<16x128xf32> to vector<16x128xbf16>
    %cst_54 = arith.constant dense<0.000000e+00> : vector<16x128xf32>
    %128 = tpu.matmul %121, %127, %cst_54 {dimension_numbers = #tpu.dot_dimension_numbers<[1], [0], [0], [1], [0, 0, 1, 1], [], []>} : vector<16x16xbf16>, vector<16x128xbf16>, vector<16x128xf32> -> vector<16x128xf32>
    %c0_55 = arith.constant 0 : index
    %c1536 = arith.constant 1536 : index
    %129 = vector.load %arg2[%c0_55, %c1536] : memref<16x1792xbf16, #tpu.memory_space<vmem>>, vector<16x16xbf16>
    %130 = arith.truncf %120 : vector<16x128xf32> to vector<16x128xbf16>
    %cst_56 = arith.constant dense<0.000000e+00> : vector<16x128xf32>
    %131 = tpu.matmul %129, %130, %cst_56 {dimension_numbers = #tpu.dot_dimension_numbers<[1], [0], [0], [1], [0, 0, 1, 1], [], []>} : vector<16x16xbf16>, vector<16x128xbf16>, vector<16x128xf32> -> vector<16x128xf32>
    %132 = arith.addf %128, %131 : vector<16x128xf32>
    %c0_57 = arith.constant 0 : index
    %c6 = arith.constant 6 : index
    %133 = vector.load %arg3[%c0_57, %c6] : memref<16x8xf32, #tpu.memory_space<vmem>>, vector<16x1xf32>
    %134 = vector.broadcast %133 : vector<16x1xf32> to vector<16x128xf32>
    %135 = arith.addf %132, %134 : vector<16x128xf32>
    %cst_58 = arith.constant 0.000000e+00 : f32
    %136 = vector.broadcast %cst_58 : f32 to vector<16x128xf32>
    %137 = arith.maximumf %135, %136 : vector<16x128xf32>
    %c0_59 = arith.constant 0 : index
    %c1664 = arith.constant 1664 : index
    %138 = vector.load %arg2[%c0_59, %c1664] : memref<16x1792xbf16, #tpu.memory_space<vmem>>, vector<16x8xbf16>
    %139 = arith.truncf %101 : vector<8x128xf32> to vector<8x128xbf16>
    %cst_60 = arith.constant dense<0.000000e+00> : vector<16x128xf32>
    %140 = tpu.matmul %138, %139, %cst_60 {dimension_numbers = #tpu.dot_dimension_numbers<[1], [0], [0], [1], [0, 0, 1, 1], [], []>} : vector<16x8xbf16>, vector<8x128xbf16>, vector<16x128xf32> -> vector<16x128xf32>
    %c0_61 = arith.constant 0 : index
    %c7 = arith.constant 7 : index
    %141 = vector.load %arg3[%c0_61, %c7] : memref<16x8xf32, #tpu.memory_space<vmem>>, vector<16x1xf32>
    %142 = vector.broadcast %141 : vector<16x1xf32> to vector<16x128xf32>
    %143 = arith.addf %140, %142 : vector<16x128xf32>
    %144 = arith.addf %137, %143 : vector<16x128xf32>
    %cst_62 = arith.constant 0.000000e+00 : f32
    %145 = vector.broadcast %cst_62 : f32 to vector<16x128xf32>
    %146 = arith.maximumf %144, %145 : vector<16x128xf32>
    %c0_63 = arith.constant 0 : index
    %c0_64 = arith.constant 0 : index
    %147 = vector.load %arg4[%c0_63, %c0_64] : memref<16x128xf32, #tpu.memory_space<vmem>>, vector<16x128xf32>
    tpu.vector_store %arg4[%c0_63, %c0_64], %146 {strides = array<i32>} : memref<16x128xf32, #tpu.memory_space<vmem>>, vector<16x128xf32>,
    return
  }
  func.func @transform_0(%arg0: i32) -> (i32, i32) {
    %c0_i32 = arith.constant 0 : i32
    %c0_i32_0 = arith.constant 0 : i32
    return %c0_i32, %arg0 : i32, i32
  }
  func.func @transform_1(%arg0: i32) -> (i32, i32) {
    %c0_i32 = arith.constant 0 : i32
    %c0_i32_0 = arith.constant 0 : i32
    %c0_i32_1 = arith.constant 0 : i32
    return %c0_i32, %c0_i32_0 : i32, i32
  }
  func.func @transform_2(%arg0: i32) -> (i32, i32) {
    %c0_i32 = arith.constant 0 : i32
    %c0_i32_0 = arith.constant 0 : i32
    %c0_i32_1 = arith.constant 0 : i32
    return %c0_i32, %c0_i32_0 : i32, i32
  }
  func.func @transform_3(%arg0: i32) -> (i32, i32) {
    %c0_i32 = arith.constant 0 : i32
    %c0_i32_0 = arith.constant 0 : i32
    return %c0_i32, %arg0 : i32, i32
  }
}

</mosaic_0001>

<bundles_post_ra>
// kernel: tpu_custom_call.1
= control target key start
LH: loop header
LB: loop body
LE: loop exit
PB: predicated region body
PF: predicated region fallthrough
CT: control target
= control target key end

     0   :  { %8 = vsyncpa [#allocation3], 0  ;;  %s726_s0 = inlined_call_operand.vmem [shape: f32[8,128], index: 0, kind: input, shape index: {}]   ;;  %s727_s1 = inlined_call_operand.hbm [shape: bf16[16,1792], index: 1, kind: input, shape index: {}]   ;;  %s728_s2 = inlined_call_operand.vmem [shape: f32[16,8], index: 2, kind: input, shape index: {}]   ;;  %s729_s3 = inlined_call_operand.hbm [shape: f32[16,128], index: 3, kind: output, shape index: {}]  }
   0x1   :  { %9 = vsyncpa [#allocation4], 0  ;;  %s16_s14 = sshll.u32 %s727_s1, 4  ;;  %s618_s15 = smov [#allocation2]   ;;  %s17_s14 = int_to_ptr.hbm [resolvable:$true] %s16_s14 }
   0x2   :  { %s18_s16 = sshll.u32 %s618_s15, 4  ;;  %s619_s17 = smov 896   ;;  %s19_s16 = int_to_ptr.vmem [resolvable:$true] %s18_s16 }
   0x3   :  { %s620_s18 = smov 56  }
   0x4   :  { %24 = dma.hbm_to_vmem [thread:$0]  %s17_s14, 1792, %s19_s16, [#allocation3], %s619_s17, %s619_s17, %s620_s18  }
   0x5   :  { %614 = dma.done.wait [#allocation3], 1792  }
   0x6   :  { %615 = vsyncadd [#allocation3], 4294965504  ;;  %v46_v0 = vld [vmem:[%s726_s0] sm:$0xff]  ;;  %vm61_vm0 = vcmask 1043456   ;;  %s621_s21 = smov 1   ;;  %vm57_vm1 = vcmask 64512   ;;  %v32_v6 = vlaneseq }
   0x7   :  { %48 = vrot.lane.b32.xlu0 %v46_v0, %s621_s21  ;;  %v56_v1 = vpack.c.bf16 %v46_v0, %v46_v0  ;;  %v55_v3 = vld [vmem:[#allocation2 + $0x4] sm:$0xf]  ;;  %v622_v5 = vmov 0   ;;  %v47_v13 = vld [vmem:[#allocation2] sm:$0xf]  ;;  %v623_v26 = vmov 1  }
   0x8   :  { %v667_v4 = vld [vmem:[%s728_s2] sm:$0xff]  ;;  %549 = vset.pattern.permute.xlu0 %v622_v5  ;;  %v33_v7 = vand.u32 127, %v32_v6  ;;  %v110_v24 = vld [vmem:[#allocation2 + $0xc] sm:$0xf]  ;;  %v156_v25 = vld [vmem:[#allocation2 + $0x10] sm:$0xf]  ;;  %550 = vset.pattern.permute.xlu1 %v623_v26 }
   0x9   :  { %v63_v2 = vsel %vm61_vm0, %v56_v1, 0  ;;  %v624_v27 = vmov 2   ;;  %v105_v32 = vld [vmem:[#allocation2 + $0x8] sm:$0xf]  ;;  %s625_s0 = smov 2   ;;  %v626_v50 = vmov 3  }
   0xa   :  { %72 = vmatpush.bf16.msra.mxu0 %v63_v2  ;;  %v670_v8 = vand.u32 31, %v33_v7  ;;  %551 = vset.pattern.permute.xlu2 %v624_v27  ;;  %v187_v49 = vld [vmem:[#allocation2 + $0x18] sm:$0xf]  ;;  %v179_v55 = vld [vmem:[#allocation2 + $0x14] sm:$0xf]  ;;  %s628_s23 = smov 4  }
   0xb   :  { %158 = vperm.xlu2 %551, %v667_v4   ;;  %v349_v26 = vld [vmem:[%s728_s2 + $0x8] sm:$0xff]  ;;  %v629_v27 = vmov 5   ;;  %vm381_vm5 = vcmask 130048   ;;  %s632_s2 = smov [#allocation5]   ;;  %s477_s29 = sshll.u32 %s729_s3, 4  ;;  %s478_s29 = int_to_ptr.hbm [resolvable:$true] %s477_s29 }
   0xc   :  { %vm50_vm2 = vcmp.ge.s32.totalorder %v670_v8, 1  ;;  %vm182_vm3 = vcmp.ge.s32.totalorder %v670_v8, 2  ;;  %vm290_vm4 = vcmp.ge.s32.totalorder %v670_v8, 4  ;;  %s475_s26 = sshll.u32 %s632_s2, 4  ;;  %s633_s30 = smov 128   ;;  %s476_s26 = int_to_ptr.vmem [resolvable:$true] %s475_s26 }
   0xd   :  { %490 = vmatmul.msk.bf16.vlgmr.msra.gmra.mxu0 %vm57_vm1, %v55_v3  ;;  %v627_v3 = vmov 4   ;;  %vm518_vm6 = vmpackc.low %vm290_vm4, %vm290_vm4  ;;  %s634_s4 = smov 8  }
   0xe   :  { %171 = vmatpush.bf16.msrb.mxu0 %v63_v2  ;;  %v238_v2 = vld [vmem:[#allocation2 + $0x20] sm:$0xf] }
   0xf   :  { %100 = vperm.xlu0 %549, %v667_v4  }
  0x13   :  { %554 = vset.pattern.permute.xlu2 %v629_v27 }
  0x17   :  { %553 = vset.pattern.permute.xlu0 %v627_v3 }
  0x18   :  { %279 = vperm.xlu0 %553, %v667_v4  }
  0x1d   :  { %494 = vmatmul.msk.bf16.vlgmr.msrb.gmra.mxu0 %vm57_vm1, %v156_v25 }
  0x65   :  { %v159_v39 = vpop.permute.xlu2 %158 }
  0x79   :  { %v49_v9 = vpop.permute.xlu0 %48 }
  0x7a   :  { %v53_v10 = vsel %vm50_vm2, %v49_v9, 0.0 }
  0x7b   :  { %v54_v11 = vpack.c.bf16 %v53_v10, %v53_v10  ;;  %v233_v10 = vld [vmem:[#allocation2 + $0x1c] sm:$0xf] }
  0x7d   :  { %v82_v12 = vsel %vm61_vm0, %v54_v11, 0 }
  0x7e   :  { %91 = vmatpush.bf16.msra.mxu1 %v82_v12 }
  0x81   :  { %491 = vmatmul.msk.bf16.vlgmr.msra.gmra.mxu1 %vm57_vm1, %v47_v13  ;;  %v101_v17 = vpop.permute.xlu0 %100 }
  0x8a   :  { %v74_v14 = vpop.f32.mrf.mxu0 }
  0x92   :  { %v76_v15 = vpop.f32.mrf.mxu0 }
  0x9a   :  { %v173_v34 = vpop.f32.mrf.mxu0 }
  0x9b   :  { %v174_v42 = vadd.f32 %v173_v34, %v159_v39 }
  0xa2   :  { %v175_v36 = vpop.f32.mrf.mxu0 }
  0xfe   :  { %v93_v16 = vpop.f32.mrf.mxu1 }
  0xff   :  { %v94_v18 = vadd.f32 %v93_v16, %v74_v14  ;;  %v280_v14 = vpop.permute.xlu0 %279 }
 0x101   :  { %v103_v19 = vadd.f32 %v101_v17, %v94_v18 }
 0x103   :  { %v104_v20 = vmax.f32 %v103_v19, 0.0 }
 0x105   :  { %106 = vrot.lane.b32.xlu1 %v104_v20, %s621_s21  ;;  %v111_v21 = vpack.c.bf16 %v104_v20, %v104_v20 }
 0x106   :  { %v95_v22 = vpop.f32.mrf.mxu1 }
 0x107   :  { %v116_v23 = vsel %vm61_vm0, %v111_v21, 0 }
 0x108   :  { %125 = vmatpush.bf16.msra.mxu2 %v116_v23  ;;  %v501_v23 = vld [vmem:[#allocation2 + $0x28] sm:$0xf] }
 0x10b   :  { %492 = vmatmul.msk.bf16.vlgmr.msra.gmra.mxu2 %vm57_vm1, %v110_v24  ;;  %v528_v24 = vld [vmem:[#allocation2 + $0x5c] sm:$0xf0] }
 0x10c   :  { %v502_v25 = vor.u32 %v528_v24, %v501_v23 }
 0x10d   :  { %151 = vperm.xlu1 %550, %v667_v4  }
 0x115   :  { %552 = vset.pattern.permute.xlu1 %v626_v50  ;;  %v530_v50 = vld [vmem:[#allocation2 + $0x64] sm:$0xf0] }
 0x116   :  { %228 = vperm.xlu1 %552, %v667_v4  }
 0x11e   :  { %555 = vset.pattern.permute.xlu1 %v629_v27 }
 0x177   :  { %v107_v28 = vpop.permute.xlu1 %106 }
 0x178   :  { %v108_v29 = vsel %vm50_vm2, %v107_v28, 0.0 }
 0x179   :  { %v109_v30 = vpack.c.bf16 %v108_v29, %v108_v29 }
 0x17b   :  { %v135_v31 = vsel %vm61_vm0, %v109_v30, 0  ;;  %v506_v30 = vld [vmem:[#allocation2 + $0x24] sm:$0xf] }
 0x17c   :  { %144 = vmatpush.bf16.msra.mxu3 %v135_v31  ;;  %v527_v31 = vld [vmem:[#allocation2 + $0x58] sm:$0xf0] }
 0x17d   :  { %v507_v34 = vor.u32 %v527_v31, %v506_v30 }
 0x17f   :  { %493 = vmatmul.msk.bf16.vlgmr.msra.gmra.mxu3 %vm57_vm1, %v105_v32  ;;  %v152_v37 = vpop.permute.xlu1 %151 }
 0x188   :  { %v229_v59 = vpop.permute.xlu1 %228 }
 0x18e   :  { %v127_v33 = vpop.f32.mrf.mxu2 }
 0x196   :  { %v129_v35 = vpop.f32.mrf.mxu2 }
 0x202   :  { %v146_v38 = vpop.f32.mrf.mxu3 }
 0x203   :  { %v147_v40 = vadd.f32 %v146_v38, %v127_v33 }
 0x205   :  { %v154_v41 = vadd.f32 %v152_v37, %v147_v40 }
 0x207   :  { %v155_v43 = vmax.f32 %v154_v41, 0.0 }
 0x209   :  { %v177_v44 = vadd.f32 %v174_v42, %v155_v43 }
 0x20a   :  { %v148_v45 = vpop.f32.mrf.mxu3 }
 0x20b   :  { %v178_v46 = vmax.f32 %v177_v44, 0.0 }
 0x20d   :  { %180 = vrot.lane.b32.xlu2 %v178_v46, %s625_s0  ;;  %v188_v47 = vpack.c.bf16 %v178_v46, %v178_v46 }
 0x20f   :  { %v193_v48 = vsel %vm61_vm0, %v188_v47, 0 }
 0x210   :  { %202 = vmatpush.bf16.msrb.mxu1 %v193_v48 }
 0x213   :  { %495 = vmatmul.msk.bf16.vlgmr.msrb.gmra.mxu1 %vm57_vm1, %v187_v49  ;;  %v511_v49 = vld [vmem:[#allocation2 + $0x30] sm:$0xf] }
 0x267   :  { %v181_v51 = vpop.permute.xlu2 %180 }
 0x268   :  { %v185_v52 = vsel %vm182_vm3, %v181_v51, 0.0  ;;  %v512_v51 = vor.u32 %v530_v50, %v511_v49 }
 0x269   :  { %v186_v53 = vpack.c.bf16 %v185_v52, %v185_v52  ;;  %v524_v52 = vld [vmem:[#allocation2 + $0x34] sm:$0xf] }
 0x26b   :  { %v212_v54 = vsel %vm61_vm0, %v186_v53, 0  ;;  %v531_v53 = vld [vmem:[#allocation2 + $0x68] sm:$0xf0] }
 0x26c   :  { %221 = vmatpush.bf16.msrb.mxu2 %v212_v54  ;;  %v525_v54 = vor.u32 %v531_v53, %v524_v52 }
 0x26f   :  { %496 = vmatmul.msk.bf16.vlgmr.msrb.gmra.mxu2 %vm57_vm1, %v179_v55  ;;  %v630_v55 = vmov 6  }
 0x270   :  { %561 = vset.pattern.permute.xlu0 %v630_v55 }
 0x271   :  { %422 = vperm.xlu0 %561, %v667_v4  }
 0x290   :  { %v204_v56 = vpop.f32.mrf.mxu1 }
 0x298   :  { %v206_v57 = vpop.f32.mrf.mxu1 }
 0x2f2   :  { %v223_v58 = vpop.f32.mrf.mxu2 }
 0x2f3   :  { %v224_v60 = vadd.f32 %v223_v58, %v204_v56  ;;  %v631_v56 = vmov 7  }
 0x2f4   :  { %565 = vset.pattern.permute.xlu0 %v631_v56 }
 0x2f5   :  { %v231_v61 = vadd.f32 %v229_v59, %v224_v60  ;;  %v516_v60 = vld [vmem:[#allocation2 + $0x2c] sm:$0xf] }
 0x2f7   :  { %v232_v62 = vmax.f32 %v231_v61, 0.0  ;;  %v529_v61 = vld [vmem:[#allocation2 + $0x60] sm:$0xf0] }
 0x2f9   :  { %234 = vrot.lane.b32.xlu2 %v232_v62, %s625_s0  ;;  %v239_v63 = vpack.c.bf16 %v232_v62, %v232_v62 }
 0x2fa   :  { %v225_v0 = vpop.f32.mrf.mxu2 }
 0x2fb   :  { %v244_v1 = vsel %vm61_vm0, %v239_v63, 0  ;;  %v517_v63 = vor.u32 %v529_v61, %v516_v60 }
 0x2fc   :  { %253 = vmatpush.bf16.msrb.mxu3 %v244_v1 }
 0x2ff   :  { %497 = vmatmul.msk.bf16.vlgmr.msrb.gmra.mxu3 %vm57_vm1, %v238_v2  ;;  %v423_v2 = vpop.permute.xlu0 %422 }
 0x301   :  { %352 = vperm.xlu2 %554, %v667_v4  }
 0x309   :  { %563 = vset.pattern.permute.xlu2 %v631_v56 }
 0x353   :  { %v235_v5 = vpop.permute.xlu2 %234 }
 0x354   :  { %v236_v6 = vsel %vm182_vm3, %v235_v5, 0.0 }
 0x355   :  { %v237_v7 = vpack.c.bf16 %v236_v6, %v236_v6 }
 0x357   :  { %v263_v9 = vsel %vm61_vm0, %v237_v7, 0 }
 0x358   :  { %272 = vmatpush.bf16.msra.mxu0 %v263_v9 }
 0x35b   :  { %498 = vmatmul.msk.bf16.vlgmr.msra.gmra.mxu0 %vm57_vm1, %v233_v10  ;;  %v353_v38 = vpop.permute.xlu2 %352 }
 0x382   :  { %v255_v11 = vpop.f32.mrf.mxu3 }
 0x38a   :  { %v257_v12 = vpop.f32.mrf.mxu3 }
 0x3d8   :  { %v274_v13 = vpop.f32.mrf.mxu0 }
 0x3d9   :  { %v275_v15 = vadd.f32 %v274_v13, %v255_v11 }
 0x3db   :  { %v282_v16 = vadd.f32 %v280_v14, %v275_v15 }
 0x3dd   :  { %v283_v17 = vmax.f32 %v282_v16, 0.0 }
 0x3df   :  { %v284_v18 = vadd.f32 %v283_v17, %v178_v46 }
 0x3e0   :  { %v276_v19 = vpop.f32.mrf.mxu0 }
 0x3e1   :  { %v285_v20 = vmax.f32 %v284_v18, 0.0 }
 0x3e3   :  { %288 = vrot.lane.b32.xlu1 %v285_v20, %s628_s23  ;;  %v297_v21 = vpack.c.bf16 %v285_v20, %v285_v20 }
 0x3e5   :  { %v307_v22 = vsel %vm61_vm0, %v297_v21, 0 }
 0x3e6   :  { %316 = vmatpush.bf16.msra.mxu1 %v307_v22 }
 0x3e9   :  { %503 = vmatmul.msk.bf16.vlgmr.msra.gmra.mxu1 %vm57_vm1, %v502_v25 }
 0x3ea   :  { %458 = vmatpush.bf16.msrb.mxu1 %v307_v22 }
 0x3eb   :  { %357 = vperm.xlu1 %555, %v349_v26  }
 0x3f3   :  { %562 = vset.pattern.permute.xlu1 %v630_v55 }
 0x3f4   :  { %426 = vperm.xlu1 %562, %v349_v26  }
 0x3f9   :  { %526 = vmatmul.msk.bf16.vlgmr.msrb.gmra.mxu1 %vm57_vm1, %v525_v54 }
 0x3fc   :  { %564 = vset.pattern.permute.xlu1 %v631_v56 }
 0x3fd   :  { %440 = vperm.xlu1 %564, %v349_v26  }
 0x455   :  { %v289_v28 = vpop.permute.xlu1 %288 }
 0x456   :  { %v293_v29 = vsel %vm290_vm4, %v289_v28, 0.0 }
 0x457   :  { %v294_v32 = vpack.c.bf16 %v293_v29, %v293_v29 }
 0x459   :  { %v332_v33 = vsel %vm61_vm0, %v294_v32, 0 }
 0x45a   :  { %341 = vmatpush.bf16.msra.mxu2 %v332_v33 }
 0x45d   :  { %508 = vmatmul.msk.bf16.vlgmr.msra.gmra.mxu2 %vm57_vm1, %v507_v34  ;;  %v358_v41 = vpop.permute.xlu1 %357 }
 0x466   :  { %v318_v35 = vpop.f32.mrf.mxu1  ;;  %v427_v1 = vpop.permute.xlu1 %426 }
 0x46e   :  { %v320_v39 = vpop.f32.mrf.mxu1 }
 0x46f   :  { %v441_v15 = vpop.permute.xlu1 %440 }
 0x4e0   :  { %v343_v36 = vpop.f32.mrf.mxu2 }
 0x4e1   :  { %v344_v37 = vadd.f32 %v343_v36, %v318_v35 }
 0x4e3   :  { %v360_v42 = vadd.f32 %v353_v38, %v344_v37 }
 0x4e5   :  { %v362_v45 = vmax.f32 %v360_v42, 0.0 }
 0x4e8   :  { %v345_v40 = vpop.f32.mrf.mxu2 }
 0x4e9   :  { %v346_v43 = vadd.f32 %v345_v40, %v320_v39 }
 0x4eb   :  { %v361_v44 = vadd.f32 %v358_v41, %v346_v43 }
 0x4ed   :  { %v363_v46 = vmax.f32 %v361_v44, 0.0 }
 0x4ef   :  { %v556_v47 = vpack.i.bf16 %v363_v46, %v362_v45  ;;  %v375_v48 = vpack.c.bf16 %v363_v46, %v362_v45 }
 0x4f1   :  { %557 = vrot.lane.b32.xlu2 %v556_v47, %s628_s23  ;;  %392 = vmatpush.bf16.msra.mxu3 %v375_v48 }
 0x4f4   :  { %513 = vmatmul.msk.bf16.vlgmr.msra.gmra.mxu3 %vm381_vm5, %v512_v51 }
 0x4f9   :  { %436 = vperm.xlu2 %563, %v667_v4   ;;  %v460_v4 = vpop.f32.mrf.mxu1 }
 0x501   :  { %v462_v16 = vpop.f32.mrf.mxu1 }
 0x502   :  { %v463_v19 = vadd.f32 %v462_v16, %v441_v15 }
 0x54b   :  { %v558_v57 = vpop.permute.xlu2 %557 }
 0x54c   :  { %v560_v58 = vunpack.i.h.bf16 %v558_v57  ;;  %v559_v59 = vunpack.i.l.bf16 %v558_v57 }
 0x54e   :  { %v519_v62 = vpack.c.bf16 %v560_v58, %v559_v59 }
 0x550   :  { %520 = vmatpush.bf16.msk.msrb.mxu0 %vm518_vm6, %v519_v62 }
 0x553   :  { %521 = vmatmul.msk.bf16.vlgmr.msrb.gmra.mxu0 %vm381_vm5, %v517_v63  ;;  %v437_v5 = vpop.permute.xlu2 %436 }
 0x554   :  { %v461_v9 = vadd.f32 %v460_v4, %v437_v5 }
 0x577   :  { %v394_v0 = vpop.f32.mrf.mxu3 }
 0x57f   :  { %v396_v12 = vpop.f32.mrf.mxu3 }
 0x5d0   :  { %v416_v3 = vpop.f32.mrf.mxu0 }
 0x5d1   :  { %v417_v6 = vadd.f32 %v416_v3, %v394_v0 }
 0x5d3   :  { %v429_v7 = vadd.f32 %v423_v2, %v417_v6 }
 0x5d5   :  { %v431_v10 = vmax.f32 %v429_v7, 0.0 }
 0x5d7   :  { %v465_v11 = vadd.f32 %v461_v9, %v431_v10 }
 0x5d8   :  { %v418_v8 = vpop.f32.mrf.mxu0 }
 0x5d9   :  { %v419_v13 = vadd.f32 %v418_v8, %v396_v12  ;;  %v467_v14 = vmax.f32 %v465_v11, 0.0 }
 0x5db   :  { %v430_v17 = vadd.f32 %v427_v1, %v419_v13  ;;  %469 = vst [vmem:[#allocation5] sm:$0xff] %v467_v14 }
 0x5dd   :  { %v432_v18 = vmax.f32 %v430_v17, 0.0 }
 0x5df   :  { %v466_v20 = vadd.f32 %v463_v19, %v432_v18 }
 0x5e1   :  { %v468_v21 = vmax.f32 %v466_v20, 0.0 }
 0x5e3   :  { %470 = vst [vmem:[#allocation5 + $0x8] sm:$0xff] %v468_v21 }
 0x5e4   :  { %483 = dma.vmem_to_hbm [thread:$0]  %s476_s26, 256, %s478_s29, [#allocation4], %s633_s30, %s633_s30, %s634_s4  }
 0x5e5   :  { %616 = dma.done.wait [#allocation4], 256  }
 0x5e6   :  { %617 = vsyncadd [#allocation4], 4294967040 }
 0x5e7   :  { %488 = vsyncpa [#allocation3], 1 }
 0x5e8   :  { %489 = vsyncpa [#allocation4], 1 }

</bundles_post_ra>
